<compile_context>
chip_gen: v5e
topology: v5e:2x2
jax: 0.10.0
libtpu: 0.0.40
codegen_flags: <defaults>
</compile_context>

<pallas_src>
import functools

import jax
import jax.numpy as jnp
from jax.experimental import pallas as pl
from jax.experimental.pallas import tpu as pltpu

# ---- problem sizes (small, consistent with the module) --------------------
B = 16         # batch (demo; any size works, padded to a multiple of TILE_B)
D_IN = 64      # encoder input features
H = 100        # encoder hidden size (fixed by nn.Linear(100, 8))
Z = 8          # latent size (fixed by nn.Linear(100, 8))
D_OUT = 64     # decoder output features

LANE = 128     # padded feature width of every stage
TILE_B = 8     # batch tile per grid step (use 128-256 for large batches)

# column offsets of the four 128-wide blocks inside the packed weight/bias slabs
C_ENC, C_MU, C_LS, C_DEC = 0, 128, 256, 384
PACK_W = 4 * LANE  # 512


# ---- fused VAE forward kernel ----------------------------------------------
def vae_kernel(x_ref, w_ref, b_ref, std_ref, o_ref):
    x = x_ref[...]                                   # (TILE_B, 128)

    # encoder: Linear(D_IN, H) + ReLU                (block 0 of the weight slab)
    h = jnp.dot(x, w_ref[:, C_ENC:C_ENC + LANE],
                preferred_element_type=jnp.float32)
    h = jnp.maximum(h + b_ref[:, C_ENC:C_ENC + LANE], 0.0)

    # fused mu / log_sigma heads: ONE MXU pass over the (128, 256) middle slab,
    # then split at the 128-lane boundary (static, lane-aligned slices).
    mls = (jnp.dot(h, w_ref[:, C_MU:C_MU + 2 * LANE],
                   preferred_element_type=jnp.float32)
           + b_ref[:, C_MU:C_MU + 2 * LANE])          # (TILE_B, 256)
    mu = mls[:, 0:LANE]
    sigma = jnp.exp(mls[:, LANE:2 * LANE])
    z = mu + sigma * std_ref[...]                     # padded lanes stay exact

    # decoder: Linear(Z, D_OUT) + sigmoid             (block 3)
    out = (jnp.dot(z, w_ref[:, C_DEC:C_DEC + LANE],
                   preferred_element_type=jnp.float32)
           + b_ref[:, C_DEC:C_DEC + LANE])
    o_ref[...] = jax.nn.sigmoid(out)                  # 128-wide lane-dense store


# ---- one-time parameter packing (static; keep the result device-resident) --
def pack_params(params):
    we, be, wmu, bmu, wls, bls, wd, bd = params
    w = jnp.zeros((LANE, PACK_W), jnp.float32)
    w = w.at[:D_IN, C_ENC:C_ENC + H].set(we)
    w = w.at[:H, C_MU:C_MU + Z].set(wmu)
    w = w.at[:H, C_LS:C_LS + Z].set(wls)
    w = w.at[:Z, C_DEC:C_DEC + D_OUT].set(wd)

    b = jnp.zeros((1, PACK_W), jnp.float32)
    b = b.at[0, C_ENC:C_ENC + H].set(be)
    b = b.at[0, C_MU:C_MU + Z].set(bmu)
    b = b.at[0, C_LS:C_LS + Z].set(bls)
    b = b.at[0, C_DEC:C_DEC + D_OUT].set(bd)
    return jax.device_put(w), jax.device_put(b)


# ---- per-call path: pad only x and std, run gridded kernel -----------------
@functools.partial(jax.jit, static_argnames=("tile_b",))
def vae_forward(x, w_pack, b_pack, std, *, tile_b=TILE_B):
    n = x.shape[0]
    pb = pl.cdiv(n, tile_b) * tile_b
    x_p = jnp.pad(x, ((0, pb - n), (0, LANE - D_IN)))
    std_p = jnp.pad(std, ((0, pb - n), (0, LANE - Z)))

    cost = pl.CostEstimate(
        flops=2 * pb * LANE * PACK_W,                # 3 matmuls, K=128, N=128/256/128
        transcendentals=2 * pb * LANE,               # exp + sigmoid
        bytes_accessed=(LANE * PACK_W + PACK_W) * 4 + 3 * pb * LANE * 4,
    )

    out_p = pl.pallas_call(
        vae_kernel,
        out_shape=jax.ShapeDtypeStruct((pb, LANE), jnp.float32),
        grid=(pb // tile_b,),
        in_specs=[
            pl.BlockSpec((tile_b, LANE), lambda i: (i, 0)),   # x: streamed per tile
            pl.BlockSpec((LANE, PACK_W), lambda i: (0, 0)),   # weights: VMEM-resident
            pl.BlockSpec((1, PACK_W), lambda i: (0, 0)),      # biases:  VMEM-resident
            pl.BlockSpec((tile_b, LANE), lambda i: (i, 0)),   # std: streamed per tile
        ],
        out_specs=pl.BlockSpec((tile_b, LANE), lambda i: (i, 0)),
        compiler_params=pltpu.CompilerParams(
            dimension_semantics=("parallel",)),               # 2x on v7x (2 TCs)
        cost_estimate=cost,
    )(x_p, w_pack, b_pack, std_p)

    return out_p[:n, :D_OUT]


# ---- deterministic parameter init (PyTorch-style uniform fan-in) -----------
def init_params(key):
    def linear(key, fan_in, fan_out):
        kw, kb = jax.random.split(key)
        bound = 1.0 / jnp.sqrt(fan_in)
        w = jax.random.uniform(kw, (fan_in, fan_out), jnp.float32, -bound, bound)
        b = jax.random.uniform(kb, (fan_out,), jnp.float32, -bound, bound)
        return w, b

    k1, k2, k3, k4 = jax.random.split(key, 4)
    we, be = linear(k1, D_IN, H)      # encoder
    wmu, bmu = linear(k2, H, Z)       # enc_mu
    wls, bls = linear(k3, H, Z)       # enc_log_sigma
    wd, bd = linear(k4, Z, D_OUT)     # decoder
    return (we, be, wmu, bmu, wls, bls, wd, bd)


def reference_forward(x, params, std):
    we, be, wmu, bmu, wls, bls, wd, bd = params
    h = jnp.maximum(x @ we + be, 0.0)
    mu = h @ wmu + bmu
    sigma = jnp.exp(h @ wls + bls)
    z = mu + sigma * std
    return jax.nn.sigmoid(z @ wd + bd)


if __name__ == "__main__":
    key = jax.random.PRNGKey(0)
    kx, kn, kp = jax.random.split(key, 3)

    x = jax.random.normal(kx, (B, D_IN), jnp.float32)
    std = jax.random.normal(kn, (B, Z), jnp.float32)   # reparameterization noise
    params = init_params(kp)

    # Pack / pad parameters ONCE; reuse the packed device arrays for every call.
    w_pack, b_pack = pack_params(params)

    out = vae_forward(x, w_pack, b_pack, std)
    out = jax.block_until_ready(out)

    ref = reference_forward(x, params, std)
    assert out.shape == (B, D_OUT)
    assert jnp.allclose(out, ref, atol=1e-5, rtol=1e-5), "mismatch vs reference"

    print("KERNEL_OK")
</pallas_src>

<mosaic_0001>
module attributes {stable_mosaic.version = 11 : i64} {
  func.func @vae_kernel(%arg0: i32, %arg1: memref<8x128xf32, #tpu.memory_space<vmem>>, %arg2: memref<128x512xf32, #tpu.memory_space<vmem>>, %arg3: memref<1x512xf32, #tpu.memory_space<vmem>>, %arg4: memref<8x128xf32, #tpu.memory_space<vmem>>, %arg5: memref<8x128xf32, #tpu.memory_space<vmem>>) attributes {dimension_semantics = [#tpu.dimension_semantics<parallel>], iteration_bounds = array<i64: 2>, scalar_prefetch = 0 : i64, scratch_operands = 0 : i64, tpu.core_type = #tpu.core_type<tc>, window_params = [{transform_indices = @transform_0, window_bounds = array<i64: 8, 128>}, {pipeline_mode = #tpu.pipeline_mode<synchronous>, transform_indices = @transform_1, window_bounds = array<i64: 128, 512>}, {pipeline_mode = #tpu.pipeline_mode<synchronous>, transform_indices = @transform_2, window_bounds = array<i64: 1, 512>}, {transform_indices = @transform_3, window_bounds = array<i64: 8, 128>}, {transform_indices = @transform_4, window_bounds = array<i64: 8, 128>}]} {
    %c0 = arith.constant 0 : index
    %c0_0 = arith.constant 0 : index
    %0 = vector.load %arg1[%c0, %c0_0] : memref<8x128xf32, #tpu.memory_space<vmem>>, vector<8x128xf32>
    %c0_1 = arith.constant 0 : index
    %c0_2 = arith.constant 0 : index
    %1 = vector.load %arg2[%c0_1, %c0_2] : memref<128x512xf32, #tpu.memory_space<vmem>>, vector<128x128xf32>
    %cst = arith.constant dense<0.000000e+00> : vector<8x128xf32>
    %2 = tpu.matmul %0, %1, %cst {dimension_numbers = #tpu.dot_dimension_numbers<[1], [0], [0], [1], [0, 0, 1, 1], [], []>} : vector<8x128xf32>, vector<128x128xf32>, vector<8x128xf32> -> vector<8x128xf32>
    %c0_3 = arith.constant 0 : index
    %c0_4 = arith.constant 0 : index
    %3 = vector.load %arg3[%c0_3, %c0_4] : memref<1x512xf32, #tpu.memory_space<vmem>>, vector<1x128xf32>
    %4 = vector.broadcast %3 : vector<1x128xf32> to vector<8x128xf32>
    %5 = arith.addf %2, %4 : vector<8x128xf32>
    %cst_5 = arith.constant 0.000000e+00 : f32
    %6 = vector.broadcast %cst_5 : f32 to vector<8x128xf32>
    %7 = arith.maximumf %5, %6 : vector<8x128xf32>
    %c0_6 = arith.constant 0 : index
    %c128 = arith.constant 128 : index
    %8 = vector.load %arg2[%c0_6, %c128] : memref<128x512xf32, #tpu.memory_space<vmem>>, vector<128x256xf32>
    %cst_7 = arith.constant dense<0.000000e+00> : vector<8x256xf32>
    %9 = tpu.matmul %7, %8, %cst_7 {dimension_numbers = #tpu.dot_dimension_numbers<[1], [0], [0], [1], [0, 0, 1, 1], [], []>} : vector<8x128xf32>, vector<128x256xf32>, vector<8x256xf32> -> vector<8x256xf32>
    %c0_8 = arith.constant 0 : index
    %c128_9 = arith.constant 128 : index
    %10 = vector.load %arg3[%c0_8, %c128_9] : memref<1x512xf32, #tpu.memory_space<vmem>>, vector<1x256xf32>
    %11 = vector.broadcast %10 : vector<1x256xf32> to vector<8x256xf32>
    %12 = arith.addf %9, %11 : vector<8x256xf32>
    %13 = vector.extract_strided_slice %12 {offsets = [0, 0], sizes = [8, 128], strides = [1, 1]} : vector<8x256xf32> to vector<8x128xf32>
    %14 = vector.extract_strided_slice %12 {offsets = [0, 128], sizes = [8, 128], strides = [1, 1]} : vector<8x256xf32> to vector<8x128xf32>
    %15 = math.exp %14 : vector<8x128xf32>
    %c0_10 = arith.constant 0 : index
    %c0_11 = arith.constant 0 : index
    %16 = vector.load %arg4[%c0_10, %c0_11] : memref<8x128xf32, #tpu.memory_space<vmem>>, vector<8x128xf32>
    %17 = arith.mulf %15, %16 : vector<8x128xf32>
    %18 = arith.addf %13, %17 : vector<8x128xf32>
    %c0_12 = arith.constant 0 : index
    %c384 = arith.constant 384 : index
    %19 = vector.load %arg2[%c0_12, %c384] : memref<128x512xf32, #tpu.memory_space<vmem>>, vector<128x128xf32>
    %cst_13 = arith.constant dense<0.000000e+00> : vector<8x128xf32>
    %20 = tpu.matmul %18, %19, %cst_13 {dimension_numbers = #tpu.dot_dimension_numbers<[1], [0], [0], [1], [0, 0, 1, 1], [], []>} : vector<8x128xf32>, vector<128x128xf32>, vector<8x128xf32> -> vector<8x128xf32>
    %c0_14 = arith.constant 0 : index
    %c384_15 = arith.constant 384 : index
    %21 = vector.load %arg3[%c0_14, %c384_15] : memref<1x512xf32, #tpu.memory_space<vmem>>, vector<1x128xf32>
    %22 = vector.broadcast %21 : vector<1x128xf32> to vector<8x128xf32>
    %23 = arith.addf %20, %22 : vector<8x128xf32>
    %24 = arith.negf %23 : vector<8x128xf32>
    %25 = math.exp %24 : vector<8x128xf32>
    %cst_16 = arith.constant 1.000000e+00 : f32
    %26 = vector.broadcast %cst_16 : f32 to vector<8x128xf32>
    %27 = arith.addf %26, %25 : vector<8x128xf32>
    %28 = arith.divf %26, %27 : vector<8x128xf32>
    %c0_17 = arith.constant 0 : index
    %c0_18 = arith.constant 0 : index
    %29 = vector.load %arg5[%c0_17, %c0_18] : memref<8x128xf32, #tpu.memory_space<vmem>>, vector<8x128xf32>
    tpu.vector_store %arg5[%c0_17, %c0_18], %28 {strides = array<i32>} : memref<8x128xf32, #tpu.memory_space<vmem>>, vector<8x128xf32>,
    return
  }
  func.func @transform_0(%arg0: i32) -> (i32, i32) {
    %c0_i32 = arith.constant 0 : i32
    %c0_i32_0 = arith.constant 0 : i32
    return %arg0, %c0_i32 : i32, i32
  }
  func.func @transform_1(%arg0: i32) -> (i32, i32) {
    %c0_i32 = arith.constant 0 : i32
    %c0_i32_0 = arith.constant 0 : i32
    %c0_i32_1 = arith.constant 0 : i32
    return %c0_i32, %c0_i32_0 : i32, i32
  }
  func.func @transform_2(%arg0: i32) -> (i32, i32) {
    %c0_i32 = arith.constant 0 : i32
    %c0_i32_0 = arith.constant 0 : i32
    %c0_i32_1 = arith.constant 0 : i32
    return %c0_i32, %c0_i32_0 : i32, i32
  }
  func.func @transform_3(%arg0: i32) -> (i32, i32) {
    %c0_i32 = arith.constant 0 : i32
    %c0_i32_0 = arith.constant 0 : i32
    return %arg0, %c0_i32 : i32, i32
  }
  func.func @transform_4(%arg0: i32) -> (i32, i32) {
    %c0_i32 = arith.constant 0 : i32
    %c0_i32_0 = arith.constant 0 : i32
    return %arg0, %c0_i32 : i32, i32
  }
}

</mosaic_0001>

<bundles_post_ra>
// kernel: vae_forward.1
= control target key start
LH: loop header
LB: loop body
LE: loop exit
PB: predicated region body
PF: predicated region fallthrough
CT: control target
= control target key end

     0   :  { %9 = vsyncpa [#allocation3], 0  ;;  %s825_s0 = inlined_call_operand.vmem [shape: f32[16,128], index: 0, kind: input, shape index: {}]   ;;  %s826_s1 = inlined_call_operand.hbm [shape: f32[128,512], index: 1, kind: input, shape index: {}]   ;;  %s827_s2 = inlined_call_operand.vmem [shape: f32[1,512], index: 2, kind: input, shape index: {}]   ;;  %s828_s3 = inlined_call_operand.vmem [shape: f32[16,128], index: 3, kind: input, shape index: {}]   ;;  %s829_s4 = inlined_call_operand.hbm [shape: f32[16,128], index: 4, kind: output, shape index: {}]  }
   0x1   :  { %10 = vsyncpa [#allocation4], 0 }
   0x2   :  { %12 = vsyncpa [#allocation4 + $0x1], 0  ;;  %s711_s15 = smov 0   ;;  %s713_s16 = smov 0  }
   0x3   :  { %s715_s17 = smov 0   ;;  %s717_s18 = smov 0  }
   0x4 LB: > { %s732_s19 = sadd.s32 4294967295, %s681_s18   ;;  %s511_s20 = sadd.s32 4294967294, %s681_s18   ;;  %s681_s18 = sphi %s717_s18, %s835_s18   ;;  %s677_s17 = sphi %s715_s17, %s834_s17   ;;  %s673_s16 = sphi %s713_s16, %s833_s16   ;;  %s669_s15 = sphi %s711_s15, %s832_s15  }
   0x5   : > { %s736_s21 = sadd.s32 1, %s681_s18   ;;  %s119_s22 = sadd.s32 1, %s677_s17 }
   0x6   : > { %s116_s23 = ssub.s32 %s681_s18, %s736_s21  ;;  %p129_p0 = scmp.ne.s32.totalorder %s677_s17, %s673_s16 }
   0x7   : > { %p117_p1 = scmp.eq.s32.totalorder %s116_s23, 0  ;;  %p130_p2 = scmp.eq.s32.totalorder %s732_s19, 1 }
   0x8   : > { %p135_p3 = scmp.ne.s32.totalorder %s673_s16, %s669_s15  ;;  %p136_p4 = scmp.eq.s32.totalorder %s511_s20, 1 }
   0x9   : > { %s747_s24 = scalar_select %p117_p1, %s677_s17, %s119_s22  }
   0xa   : > { %p749_p5 = por %p130_p2, %p129_p0  ;;  %p753_p6 = por %p136_p4, %p135_p3 }
   0xb   : > { %p512_p7 = scmp.ge.s32.totalorder %s681_s18, 1  ;;  %p143_p8 = scmp.lt.s32.totalorder %s681_s18, 3 }
   0xc   : > { %p539_p9 = scmp.eq.s32.totalorder %s732_s19, 0  ;;  %s154_s29 = sshll.u32 %s826_s1, 4  ;;  %s155_s29 = int_to_ptr.hbm [resolvable:$true] %s154_s29 }
   0xd   : > { %p144_p10 = pnand %p512_p7, %p143_p8  ;;  %s683_s30 = smov [#allocation2]  }
   0xe   : > { %s156_s5 = sshll.u32 %s683_s30, 4  ;;  %s684_s6 = smov 512   ;;  %s157_s5 = int_to_ptr.vmem [resolvable:$true] %s156_s5 }
   0xf   : > { %p531_p11 = pneg %p144_p10  ;;  %s685_s7 = smov 32  }
  0x10   : > { %189 = sbr.rel (%p144_p10) target bundleno = 496 (0x1f0), region = 36 }
  0x11   : > { %p532_p12 = pnand %p539_p9, %p531_p11 }
  0x13   : > { %534 = dma.hbm_to_vmem [thread:$0]  (!%p532_p12), %s155_s29, 8192, %s157_s5, [#allocation3], %s684_s6, %s684_s6, %s685_s7  }
  0x15   : > { %660 = dma.done.wait (%p539_p9), [#allocation3], 8192  }
  0x16   : > { %662 = vsyncadd (%p539_p9), [#allocation3], 4294959104  ;;  %v243_v0 = vld [vmem:[#allocation2 + $0x1e0] sm:$0xff]  ;;  %v299_v5 = vld [vmem:[#allocation2 + $0x1e8] sm:$0xff]  ;;  %p219_p13 = scmp.lt.s32.totalorder %s732_s19, 1  ;;  %s216_s5 = sand.u32 1, %s673_s16  }
  0x17   : > { %v242_v1 = vld [vmem:[#allocation2 + $0x1c0] sm:$0xff]  ;;  %248 = vmatpush.msra.mxu0 %v243_v0  ;;  %307 = vmatpush.msra.mxu1 %v299_v5  ;;  %v300_v6 = vld [vmem:[#allocation2 + $0x1f0] sm:$0xff]  ;;  %v297_v7 = vld [vmem:[#allocation2 + $0x1c8] sm:$0xff]  ;;  %s517_s6 = sshll.u32 %s216_s5, 3  ;;  %s522_s7 = sshll.u32 %s732_s19, 3 }
  0x18   : > { %v241_v2 = vld [vmem:[#allocation2 + $0x1a0] sm:$0xff]  ;;  %v298_v8 = vld [vmem:[#allocation2 + $0x1d0] sm:$0xff]  ;;  %327 = vmatpush.msra.mxu2 %v300_v6  ;;  %v295_v9 = vld [vmem:[#allocation2 + $0x1a8] sm:$0xff]  ;;  %s771_s8 = scalar_select %p219_p13, %s732_s19, 1 }
  0x19   : > { %249 = vmatpush.msra.mxu0 %v242_v1  ;;  %v240_v3 = vld [vmem:[#allocation2 + $0x180] sm:$0xff]  ;;  %308 = vmatpush.msra.mxu1 %v297_v7  ;;  %v296_v11 = vld [vmem:[#allocation2 + $0x1b0] sm:$0xff]  ;;  %v293_v12 = vld [vmem:[#allocation2 + $0x188] sm:$0xff]  ;;  %s423_s10 = scalar_lea.hbm %s829_s4, %s522_s7  ;;  %s218_s11 = scalar_lea.vmem [#allocation5], %s517_s6 }
  0x1a   : > { %v239_v4 = vld [vmem:[#allocation2 + $0x160] sm:$0xff]  ;;  %328 = vmatpush.msra.mxu2 %v298_v8  ;;  %v294_v14 = vld [vmem:[#allocation2 + $0x190] sm:$0xff]  ;;  %v291_v15 = vld [vmem:[#allocation2 + $0x168] sm:$0xff]  ;;  %s518_s9 = sshll.u32 %s771_s8, 3  ;;  %s427_s13 = sshll.u32 %s423_s10, 4  ;;  %s428_s13 = int_to_ptr.hbm [resolvable:$true] %s427_s13 }
  0x1b   : > { %250 = vmatpush.msra.mxu0 %v241_v2  ;;  %v238_v10 = vld [vmem:[#allocation2 + $0x140] sm:$0xff]  ;;  %309 = vmatpush.msra.mxu1 %v295_v9  ;;  %v292_v17 = vld [vmem:[#allocation2 + $0x170] sm:$0xff]  ;;  %v289_v18 = vld [vmem:[#allocation2 + $0x148] sm:$0xff]  ;;  %s222_s12 = scalar_lea.vmem %s825_s0, %s518_s9  ;;  %s226_s28 = scalar_lea.vmem %s828_s3, %s518_s9 }
  0x1c   : > { %v237_v13 = vld [vmem:[#allocation2 + $0x120] sm:$0xff]  ;;  %329 = vmatpush.msra.mxu2 %v296_v11  ;;  %v290_v20 = vld [vmem:[#allocation2 + $0x150] sm:$0xff]  ;;  %v287_v21 = vld [vmem:[#allocation2 + $0x128] sm:$0xff]  ;;  %s413_s19 = scalar_lea.sflag [#allocation4], %s216_s5  ;;  %s629_s14 = sshra.s32 %s428_s13, 4  ;;  %s630_s14 = int_to_ptr.hbm [resolvable:$true] %s629_s14 }
  0x1d   : > { %251 = vmatpush.msra.mxu0 %v240_v3  ;;  %v236_v16 = vld [vmem:[#allocation2 + $0x100] sm:$0xff]  ;;  %310 = vmatpush.msra.mxu1 %v293_v12  ;;  %v288_v23 = vld [vmem:[#allocation2 + $0x130] sm:$0xff]  ;;  %v285_v24 = vld [vmem:[#allocation2 + $0x108] sm:$0xff]  ;;  %s631_s20 = scalar_lea.hbm %s630_s14, 8  ;;  %s635_s27 = scalar_lea.hbm %s829_s4, 16 }
  0x1e   : > { %330 = vmatpush.msra.mxu2 %v294_v14  ;;  %v235_v19 = vld [vmem:[#allocation2 + $0xe0] sm:$0xff]  ;;  %v286_v26 = vld [vmem:[#allocation2 + $0x110] sm:$0xff]  ;;  %v283_v27 = vld [vmem:[#allocation2 + $0xe8] sm:$0xff]  ;;  %p632_p0 = scmp.ne.s32.totalorder %s630_s14, %s631_s20  ;;  %p636_p3 = scmp.lt.s32.totalorder %s630_s14, %s829_s4 }
  0x1f   : > { %252 = vmatpush.msra.mxu0 %v239_v4  ;;  %311 = vmatpush.msra.mxu1 %v291_v15  ;;  %v234_v22 = vld [vmem:[#allocation2 + $0xc0] sm:$0xff]  ;;  %v284_v29 = vld [vmem:[#allocation2 + $0xf0] sm:$0xff]  ;;  %v281_v30 = vld [vmem:[#allocation2 + $0xc8] sm:$0xff]  ;;  %p637_p4 = scmp.lt.s32.totalorder %s635_s27, %s631_s20 }
  0x20   : > { %331 = vmatpush.msra.mxu2 %v292_v17  ;;  %v233_v25 = vld [vmem:[#allocation2 + $0xa0] sm:$0xff]  ;;  %v282_v32 = vld [vmem:[#allocation2 + $0xd0] sm:$0xff]  ;;  %v279_v33 = vld [vmem:[#allocation2 + $0xa8] sm:$0xff]  ;;  %p633_p1 = pnand %p632_p0, %p749_p5 }
  0x21   : > { %253 = vmatpush.msra.mxu0 %v238_v10  ;;  %312 = vmatpush.msra.mxu1 %v289_v18  ;;  %v232_v28 = vld [vmem:[#allocation2 + $0x80] sm:$0xff]  ;;  %v280_v35 = vld [vmem:[#allocation2 + $0xb0] sm:$0xff]  ;;  %v277_v36 = vld [vmem:[#allocation2 + $0x88] sm:$0xff]  ;;  %p638_p7 = por %p637_p4, %p636_p3 }
  0x22   : > { %332 = vmatpush.msra.mxu2 %v290_v20  ;;  %v231_v31 = vld [vmem:[#allocation2 + $0x60] sm:$0xff]  ;;  %v278_v38 = vld [vmem:[#allocation2 + $0x90] sm:$0xff]  ;;  %v275_v39 = vld [vmem:[#allocation2 + $0x68] sm:$0xff]  ;;  %p634_p2 = pneg %p633_p1 }
  0x23   : > { %254 = vmatpush.msra.mxu0 %v237_v13  ;;  %313 = vmatpush.msra.mxu1 %v287_v21  ;;  %v230_v34 = vld [vmem:[#allocation2 + $0x40] sm:$0xff]  ;;  %v276_v41 = vld [vmem:[#allocation2 + $0x70] sm:$0xff]  ;;  %v273_v43 = vld [vmem:[#allocation2 + $0x48] sm:$0xff] }
  0x24   : > { %333 = vmatpush.msra.mxu2 %v288_v23  ;;  %v229_v37 = vld [vmem:[#allocation2 + $0x20] sm:$0xff]  ;;  %v274_v44 = vld [vmem:[#allocation2 + $0x50] sm:$0xff]  ;;  %v271_v45 = vld [vmem:[#allocation2 + $0x28] sm:$0xff]  ;;  %p639_p8 = pnand %p638_p7, %p634_p2 }
  0x25   : > { %255 = vmatpush.msra.mxu0 %v236_v16  ;;  %314 = vmatpush.msra.mxu1 %v285_v24  ;;  %v228_v40 = vld [vmem:[#allocation2] sm:$0xff]  ;;  %v272_v46 = vld [vmem:[#allocation2 + $0x30] sm:$0xff]  ;;  %v269_v47 = vld [vmem:[#allocation2 + $0x8] sm:$0xff] }
  0x26   : > { %334 = vmatpush.msra.mxu2 %v286_v26  ;;  %v227_v42 = vld [vmem:[%s222_s12] sm:$0xff]  ;;  %v270_v48 = vld [vmem:[#allocation2 + $0x10] sm:$0xff]  ;;  %v367_v49 = vld [vmem:[#allocation2 + $0x1f8] sm:$0xff]  ;;  %s425_s12 = sshll.u32 %s218_s11, 4  ;;  %s426_s12 = int_to_ptr.vmem [resolvable:$true] %s425_s12 }
  0x27   : > { %256 = vmatpush.msra.mxu0 %v235_v19  ;;  %315 = vmatpush.msra.mxu1 %v283_v27  ;;  %v366_v50 = vld [vmem:[#allocation2 + $0x1d8] sm:$0xff]  ;;  %v577_v54 = vld [vmem:[%s827_s2] ss:$0 sm:$0xff]  ;;  %v301_v5 = vld [vmem:[%s827_s2 + $0x1] sm:$0x3] }
  0x28   : > { %335 = vmatpush.msra.mxu2 %v284_v29  ;;  %372 = vmatpush.msra.mxu3 %v367_v49  ;;  %v365_v51 = vld [vmem:[#allocation2 + $0x1b8] sm:$0xff]  ;;  %v304_v6 = vperm.slane %v301_v5, 1  ;;  %v303_v10 = vperm.slane %v301_v5, 0  ;;  %v349_v12 = vld [vmem:[%s226_s28] sm:$0xff] }
  0x29   : > { %257 = vmatpush.msra.mxu0 %v234_v22  ;;  %316 = vmatpush.msra.mxu1 %v281_v30  ;;  %v364_v52 = vld [vmem:[#allocation2 + $0x198] sm:$0xff]  ;;  %v578_v17 = vld [vmem:[%s827_s2 + $0x3] ss:$0 sm:$0xff] }
  0x2a   : > { %336 = vmatpush.msra.mxu2 %v282_v32  ;;  %373 = vmatpush.msra.mxu3 %v366_v50  ;;  %v363_v53 = vld [vmem:[#allocation2 + $0x178] sm:$0xff] }
  0x2b   : > { %258 = vmatpush.msra.mxu0 %v233_v25  ;;  %317 = vmatpush.msra.mxu1 %v279_v33  ;;  %v362_v58 = vld [vmem:[#allocation2 + $0x158] sm:$0xff] }
  0x2c   : > { %337 = vmatpush.msra.mxu2 %v280_v35  ;;  %374 = vmatpush.msra.mxu3 %v365_v51  ;;  %v361_v59 = vld [vmem:[#allocation2 + $0x138] sm:$0xff] }
  0x2d   : > { %259 = vmatpush.msra.mxu0 %v232_v28  ;;  %318 = vmatpush.msra.mxu1 %v277_v36  ;;  %v360_v60 = vld [vmem:[#allocation2 + $0x118] sm:$0xff] }
  0x2e   : > { %338 = vmatpush.msra.mxu2 %v278_v38  ;;  %375 = vmatpush.msra.mxu3 %v364_v52  ;;  %v359_v61 = vld [vmem:[#allocation2 + $0xf8] sm:$0xff] }
  0x2f   : > { %260 = vmatpush.msra.mxu0 %v231_v31  ;;  %319 = vmatpush.msra.mxu1 %v275_v39  ;;  %v358_v62 = vld [vmem:[#allocation2 + $0xd8] sm:$0xff] }
  0x30   : > { %339 = vmatpush.msra.mxu2 %v276_v41  ;;  %376 = vmatpush.msra.mxu3 %v363_v53  ;;  %v357_v63 = vld [vmem:[#allocation2 + $0xb8] sm:$0xff] }
  0x31   : > { %261 = vmatpush.msra.mxu0 %v230_v34  ;;  %320 = vmatpush.msra.mxu1 %v273_v43  ;;  %v356_v0 = vld [vmem:[#allocation2 + $0x98] sm:$0xff] }
  0x32   : > { %340 = vmatpush.msra.mxu2 %v274_v44  ;;  %377 = vmatpush.msra.mxu3 %v362_v58  ;;  %v355_v1 = vld [vmem:[#allocation2 + $0x78] sm:$0xff] }
  0x33   : > { %262 = vmatpush.msra.mxu0 %v229_v37  ;;  %321 = vmatpush.msra.mxu1 %v271_v45  ;;  %v354_v2 = vld [vmem:[#allocation2 + $0x58] sm:$0xff] }
  0x34   : > { %341 = vmatpush.msra.mxu2 %v272_v46  ;;  %378 = vmatpush.msra.mxu3 %v361_v59  ;;  %v353_v3 = vld [vmem:[#allocation2 + $0x38] sm:$0xff] }
  0x35   : > { %263 = vmatpush.msra.mxu0 %v228_v40  ;;  %322 = vmatpush.msra.mxu1 %v269_v47  ;;  %v352_v4 = vld [vmem:[#allocation2 + $0x18] sm:$0xff] }
  0x36   : > { %264 = vmatmul.f32.vlgmr.msra.gmra.mxu0 %v227_v42  ;;  %342 = vmatpush.msra.mxu2 %v270_v48 }
  0x37   : > { %379 = vmatpush.msra.mxu3 %v360_v60 }
  0x39   : > { %380 = vmatpush.msra.mxu3 %v359_v61 }
  0x3b   : > { %381 = vmatpush.msra.mxu3 %v358_v62 }
  0x3d   : > { %382 = vmatpush.msra.mxu3 %v357_v63 }
  0x3f   : > { %383 = vmatpush.msra.mxu3 %v356_v0 }
  0x41   : > { %384 = vmatpush.msra.mxu3 %v355_v1 }
  0x43   : > { %385 = vmatpush.msra.mxu3 %v354_v2 }
  0x45   : > { %386 = vmatpush.msra.mxu3 %v353_v3 }
  0x47   : > { %387 = vmatpush.msra.mxu3 %v352_v4 }
  0xb3   : > { %v265_v55 = vpop.f32.mrf.mxu0 }
  0xb4   : > { %v266_v56 = vadd.f32 %v577_v54, %v265_v55 }
  0xb6   : > { %v268_v57 = vmax.f32 %v266_v56, 0.0 }
  0xb8   : > { %323 = vmatmul.f32.vlgmr.msra.gmra.mxu1 %v268_v57  ;;  %343 = vmatmul.f32.vlgmr.msra.gmra.mxu2 %v268_v57 }
 0x135   : > { %v324_v11 = vpop.f32.mrf.mxu1 }
 0x136   : > { %v325_v14 = vadd.f32 %v324_v11, %v303_v10 }
 0x13b   : > { %v344_v7 = vpop.f32.mrf.mxu2 }
 0x13c   : > { %v345_v8 = vadd.f32 %v344_v7, %v304_v6 }
 0x13e   : > { %v347_v9 = vmul.f32 1.442695, %v345_v8 }
 0x140   : > { %579 = vpow2.f32 %v347_v9 }
 0x146   : > { %v580_v13 = vpop.eup %579 }
 0x147   : > { %v350_v15 = vmul.f32 %v580_v13, %v349_v12 }
 0x149   : > { %v351_v16 = vadd.f32 %v350_v15, %v325_v14 }
 0x14b   : > { %388 = vmatmul.f32.vlgmr.msra.gmra.mxu3 %v351_v16 }
 0x1ce   : > { %v389_v18 = vpop.f32.mrf.mxu3 }
 0x1cf   : > { %v390_v19 = vadd.f32 %v578_v17, %v389_v18 }
 0x1d1   : > { %v520_v20 = vmul.f32 -1.442695, %v390_v19 }
 0x1d3   : > { %581 = vpow2.f32 %v520_v20 }
 0x1d9   : > { %v582_v21 = vpop.eup %581 }
 0x1da   : > { %v395_v22 = vadd.f32 1.0, %v582_v21 }
 0x1dc   : > { %583 = vrcp.f32 %v395_v22  ;;  %v407_v26 = vand.u32 2147483648, %v395_v22  ;;  %v405_v28 = vand.u32 2147483647, %v395_v22  ;;  %vm401_vm1 = vweird.f32 %v395_v22 }
 0x1de   : > { %v408_v30 = vor.u32 1.1754944e-38, %v407_v26  ;;  %vm406_vm3 = vcmp.eq.f32.partialorder %v405_v28, 8.507059e+37 }
 0x1e2   : > { %v584_v23 = vpop.eup %583 }
 0x1e3   : > { %v397_v24 = vmul.f32 %v584_v23, %v395_v22  ;;  %vm402_vm0 = vweird.f32 %v584_v23 }
 0x1e4   : > { %vm403_vm2 = vmor %vm401_vm1, %vm402_vm0 }
 0x1e5   : > { %v398_v25 = vsub.f32 1.0, %v397_v24 }
 0x1e7   : > { %v399_v27 = vmul.f32 %v584_v23, %v398_v25 }
 0x1e9   : > { %v400_v29 = vadd.f32 %v584_v23, %v399_v27 }
 0x1eb   : > { %v404_v31 = vsel %vm403_vm2, %v584_v23, %v400_v29 }
 0x1ec   : > { %v409_v32 = vsel %vm406_vm3, %v408_v30, %v404_v31 }
 0x1ed   : > { %411 = vst [vmem:[%s218_s11] sm:$0xff] %v409_v32 }
 0x1ee   : > { %642 = shalt.err (!%p639_p8)
}
 0x1ef   : > { %529 = dma.vmem_to_hbm [thread:$0]  (%p749_p5), %s426_s12, 128, %s428_s13, %s413_s19  }
 0x1f0 PF: > { %p541_p9 = scmp.ge.s32.totalorder %s681_s18, 2  ;;  %s439_s30 = sand.u32 1, %s669_s15  }
 0x1f1   : > { %s440_s5 = scalar_lea.sflag [#allocation4], %s439_s30 }
 0x1f2   : > { %p536_p10 = pnand %p541_p9, %p753_p6 }
 0x1f4   : > { %p537_p11 = pneg %p536_p10 }
 0x1f6   : > { %664 = dma.done.wait (%p537_p11), %s440_s5, 128  }
 0x1f7   : > { %666 = vsyncadd (%p537_p11), %s440_s5, 4294967168  ;;  %p15_p12 = scmp.ge.s32.totalorder %s736_s21, 4   ;;  %s832_s15 = smov %s673_s16 }
 0x1f8   : > { %s833_s16 = smov %s677_s17  ;;  %s834_s17 = smov %s747_s24 }
 0x1f9   : > { %s835_s18 = smov %s736_s21  ;;  %17 = sbr.rel (!%p15_p12) target bundleno = 4 (0x4), region = 79 }
 0x1fe   :  { %446 = vsyncpa [#allocation3], 1 }
 0x1ff   :  { %448 = vsyncpa [#allocation3 + $0x1], 1 }
 0x200   :  { %449 = vsyncpa [#allocation4], 1 }
 0x201   :  { %451 = vsyncpa [#allocation4 + $0x1], 1 }

</bundles_post_ra>
